<compile_context>
chip_gen: v5e
topology: v5e:2x2
jax: 0.10.0
libtpu: 0.0.40
codegen_flags: <defaults>
</compile_context>

<pallas_src>
import functools

import jax
import jax.numpy as jnp
from jax import lax
from jax.experimental import pallas as pl
from jax.experimental.pallas import tpu as pltpu


# ----------------------------------------------------------------------------
# Fused ConvBnActivation
# ----------------------------------------------------------------------------
def conv_bn_activation(x, weight, gamma, beta, running_mean, running_var,
                       *, stride=2, eps=1e-5, activation="relu",
                       compute_dtype=jnp.bfloat16):
    """Fused Conv2d(stride, bias=False, pad=k//2) + eval-BN + activation.

    x:      (N, Cin, H, W)    float32, NCHW (PyTorch layout)
    weight: (Cout, Cin, k, k) float32  (PyTorch Conv2d layout)
    returns (N, Cout, Ho, Wo) float32, NCHW
    """
    N, Cin, H, W = x.shape
    Cout, Cin_w, kh, kw = weight.shape
    assert Cin == Cin_w, "channel mismatch"
    s = int(stride)
    pad = kh // 2

    Ho = (H + 2 * pad - kh) // s + 1
    Wo = (W + 2 * pad - kw) // s + 1
    di_max = (kh - 1) // s          # max row offset within a phase image
    dj_max = (kw - 1) // s          # max col offset within a phase image
    # Phase-image extents.  +1 guard row so every tap's flat slice of length
    # Ho*Wq stays in bounds; out-of-range reads only feed the discarded
    # guard columns / zero padding.
    Hq = max(-(-(H + 2 * pad) // s), Ho + di_max) + 1
    Wq = max(-(-(W + 2 * pad) // s), Wo + dj_max)
    L = Ho * Wq                      # lane dim of the kernel output

    # --- wrapper glue: ONE gather replaces transpose + im2col + pad copies.
    pad_b = Hq * s - H - pad
    pad_r = Wq * s - W - pad
    x_p = jnp.pad(x, ((0, 0), (0, 0), (pad, pad_b), (pad, pad_r)))
    xph = (x_p.reshape(N, Cin, Hq, s, Wq, s)
               .transpose(0, 3, 5, 1, 2, 4)               # (N, s, s, Cin, Hq, Wq)
               .reshape(N, s * s, Cin, Hq * Wq)
               .astype(compute_dtype))

    # --- fold eval-mode BN into the conv weights and a per-channel bias.
    scale = (gamma.astype(jnp.float32)
             / jnp.sqrt(running_var.astype(jnp.float32) + eps))
    bias = (beta.astype(jnp.float32)
            - running_mean.astype(jnp.float32) * scale).reshape(Cout, 1)
    w_fold = weight.astype(jnp.float32) * scale[:, None, None, None]
    # per-tap, transposed for the (Cout, Cin) @ (Cin, L) in-kernel dots
    w_taps = (jnp.transpose(w_fold, (2, 3, 0, 1))          # (kh, kw, Cout, Cin)
                 .reshape(kh * kw, Cout, Cin)
                 .astype(compute_dtype))

    def kernel(xph_ref, w_ref, b_ref, o_ref):
        # xph_ref: (1, s*s, Cin, Hq*Wq)  compute_dtype
        # w_ref:   (kh*kw, Cout, Cin)    compute_dtype (BN scale folded in)
        # b_ref:   (Cout, 1)             f32
        # o_ref:   (1, Cout, L)          f32
        acc = jnp.zeros((Cout, L), jnp.float32)
        # kh*kw is small and static: a fully unrolled tap loop keeps every
        # slice offset static (contiguous lane slices, no relayout).
        for i in range(kh):
            di, p = i // s, i % s
            for j in range(kw):
                dj, q = j // s, j % s
                t = i * kw + j
                off = di * Wq + dj
                rhs = xph_ref[0, p * s + q, :, pl.ds(off, L)]   # (Cin, L)
                acc = acc + jnp.dot(w_ref[t], rhs,
                                    preferred_element_type=jnp.float32)
        y = acc + b_ref[...]                       # f32 epilogue (v5e-safe)
        if activation == "relu":
            y = jnp.maximum(y, 0.0)
        elif activation == "hardtanh":
            y = jnp.clip(y, -1.0, 1.0)
        o_ref[0] = y.astype(o_ref.dtype)

    itemsize = jnp.dtype(compute_dtype).itemsize
    cost = pl.CostEstimate(
        flops=int(2 * N * Cout * Cin * kh * kw * Ho * Wq + 2 * N * Cout * Ho * Wq),
        transcendentals=0,
        bytes_accessed=int(xph.size * itemsize + w_taps.size * itemsize
                           + bias.size * 4 + N * Cout * L * 4),
    )

    out_flat = pl.pallas_call(
        kernel,
        out_shape=jax.ShapeDtypeStruct((N, Cout, L), jnp.float32),
        grid_spec=pltpu.PrefetchScalarGridSpec(
            num_scalar_prefetch=0,
            grid=(N,),
            in_specs=[
                pl.BlockSpec((1, s * s, Cin, Hq * Wq), lambda n: (n, 0, 0, 0)),
                pl.BlockSpec((kh * kw, Cout, Cin), lambda n: (0, 0, 0)),
                pl.BlockSpec((Cout, 1), lambda n: (0, 0)),
            ],
            out_specs=pl.BlockSpec((1, Cout, L), lambda n: (n, 0, 0)),
        ),
        compiler_params=pltpu.CompilerParams(
            dimension_semantics=("parallel",)),
        cost_estimate=cost,
    )(xph, w_taps, bias)

    # (N, Cout, Ho, Wq) -> drop the Wq-Wo guard columns.  Already NCHW.
    return out_flat.reshape(N, Cout, Ho, Wq)[:, :, :, :Wo]


# ----------------------------------------------------------------------------
# Encoder forward: a stack of stride-2 ConvBnActivation blocks.
# NOTE: the original PyTorch Encoder.__init__ constructs ConvBnActivation
# blocks but never add_module()s them, so its literal forward is the identity;
# we implement the evidently intended stacked behaviour.
# ----------------------------------------------------------------------------
def encoder_forward(x, layer_params, *, stride=2, eps=1e-5, activation="relu",
                    compute_dtype=jnp.bfloat16):
    for p in layer_params:
        x = conv_bn_activation(x, p["weight"], p["gamma"], p["beta"],
                               p["mean"], p["var"], stride=stride, eps=eps,
                               activation=activation,
                               compute_dtype=compute_dtype)
    return x


# ----------------------------------------------------------------------------
# Pure-JAX reference (for correctness checks)
# ----------------------------------------------------------------------------
def _reference_layer(x, p, *, stride=2, eps=1e-5, compute_dtype=jnp.float32):
    weight = p["weight"]
    pad = weight.shape[2] // 2
    scale = p["gamma"] / jnp.sqrt(p["var"] + eps)
    bias = p["beta"] - p["mean"] * scale
    w_fold = (weight * scale[:, None, None, None]).astype(compute_dtype)
    y = lax.conv_general_dilated(
        x.astype(compute_dtype), w_fold,
        window_strides=(stride, stride),
        padding=((pad, pad), (pad, pad)),
        dimension_numbers=("NCHW", "OIHW", "NCHW"),
        preferred_element_type=jnp.float32)
    return jnp.maximum(y + bias.reshape(1, -1, 1, 1), 0.0)


if __name__ == "__main__":
    N, Cin, H, W = 2, 4, 16, 16
    layers_num, k, s = 2, 3, 2

    key = jax.random.PRNGKey(0)
    keys = jax.random.split(key, 1 + 5 * layers_num)
    x = jax.random.normal(keys[0], (N, Cin, H, W), dtype=jnp.float32)

    params, in_c = [], Cin
    for li in range(layers_num):
        out_c = in_c * 2
        kw_, kg, kb, km, kv = keys[1 + 5 * li: 6 + 5 * li]
        params.append(dict(
            weight=0.1 * jax.random.normal(kw_, (out_c, in_c, k, k), jnp.float32),
            gamma=1.0 + 0.1 * jax.random.normal(kg, (out_c,), jnp.float32),
            beta=0.1 * jax.random.normal(kb, (out_c,), jnp.float32),
            mean=0.1 * jax.random.normal(km, (out_c,), jnp.float32),
            var=jnp.abs(1.0 + 0.1 * jax.random.normal(kv, (out_c,), jnp.float32)),
        ))
        in_c = out_c

    # --- single ConvBnActivation block vs reference (same bf16 operands) ---
    conv1 = jax.jit(functools.partial(conv_bn_activation, stride=s))
    p0 = params[0]
    y1 = jax.block_until_ready(
        conv1(x, p0["weight"], p0["gamma"], p0["beta"], p0["mean"], p0["var"]))
    assert y1.shape == (N, 2 * Cin, H // s, W // s), y1.shape
    r1 = _reference_layer(x, p0, stride=s, compute_dtype=jnp.bfloat16)
    assert jnp.allclose(y1, r1, atol=5e-4, rtol=5e-4), \
        f"layer-0 mismatch: max abs diff {jnp.max(jnp.abs(y1 - r1))}"

    # --- full Encoder stack (layers_num fused conv-bn-relu blocks) ---
    enc = jax.jit(functools.partial(encoder_forward, stride=s))
    out = jax.block_until_ready(enc(x, params))
    assert out.shape == (N, Cin * 2 ** layers_num,
                         H // s ** layers_num, W // s ** layers_num), out.shape

    ref_b, ref_f = x, x
    for p in params:
        ref_b = _reference_layer(ref_b, p, stride=s, compute_dtype=jnp.bfloat16)
        ref_f = _reference_layer(ref_f, p, stride=s, compute_dtype=jnp.float32)
    assert jnp.allclose(out, ref_b, atol=5e-3, rtol=5e-3), \
        f"encoder mismatch (bf16 ref): max abs diff {jnp.max(jnp.abs(out - ref_b))}"
    assert jnp.allclose(out, ref_f, atol=1e-1, rtol=1e-1), \
        f"encoder mismatch (f32 ref): max abs diff {jnp.max(jnp.abs(out - ref_f))}"

    print("KERNEL_OK")
</pallas_src>

<mosaic_0001>
module attributes {stable_mosaic.version = 11 : i64} {
  func.func @kernel(%arg0: i32, %arg1: memref<1x4x4x90xbf16, #tpu.memory_space<vmem>>, %arg2: memref<9x8x4xbf16, #tpu.memory_space<vmem>>, %arg3: memref<8x1xf32, #tpu.memory_space<vmem>>, %arg4: memref<1x8x72xf32, #tpu.memory_space<vmem>>) attributes {dimension_semantics = [#tpu.dimension_semantics<parallel>], iteration_bounds = array<i64: 2>, scalar_prefetch = 0 : i64, scratch_operands = 0 : i64, tpu.core_type = #tpu.core_type<tc>, window_params = [{transform_indices = @transform_0, window_bounds = array<i64: 1, 4, 4, 90>}, {pipeline_mode = #tpu.pipeline_mode<synchronous>, transform_indices = @transform_1, window_bounds = array<i64: 9, 8, 4>}, {pipeline_mode = #tpu.pipeline_mode<synchronous>, transform_indices = @transform_2, window_bounds = array<i64: 8, 1>}, {transform_indices = @transform_3, window_bounds = array<i64: 1, 8, 72>}]} {
    %cst = arith.constant 0.000000e+00 : f32
    %0 = vector.broadcast %cst : f32 to vector<8x72xf32>
    %c0 = arith.constant 0 : index
    %c0_0 = arith.constant 0 : index
    %c0_1 = arith.constant 0 : index
    %c0_2 = arith.constant 0 : index
    %1 = vector.load %arg1[%c0, %c0_0, %c0_1, %c0_2] : memref<1x4x4x90xbf16, #tpu.memory_space<vmem>>, vector<1x1x4x72xbf16>
    %2 = vector.shape_cast %1 : vector<1x1x4x72xbf16> to vector<4x72xbf16>
    %c0_3 = arith.constant 0 : index
    %c0_4 = arith.constant 0 : index
    %c0_5 = arith.constant 0 : index
    %3 = vector.load %arg2[%c0_3, %c0_4, %c0_5] : memref<9x8x4xbf16, #tpu.memory_space<vmem>>, vector<1x8x4xbf16>
    %4 = vector.shape_cast %3 : vector<1x8x4xbf16> to vector<8x4xbf16>
    %cst_6 = arith.constant dense<0.000000e+00> : vector<8x72xf32>
    %5 = tpu.matmul %4, %2, %cst_6 {dimension_numbers = #tpu.dot_dimension_numbers<[1], [0], [0], [1], [0, 0, 1, 1], [], []>} : vector<8x4xbf16>, vector<4x72xbf16>, vector<8x72xf32> -> vector<8x72xf32>
    %6 = arith.addf %0, %5 : vector<8x72xf32>
    %c0_7 = arith.constant 0 : index
    %c1 = arith.constant 1 : index
    %c0_8 = arith.constant 0 : index
    %c0_9 = arith.constant 0 : index
    %7 = vector.load %arg1[%c0_7, %c1, %c0_8, %c0_9] : memref<1x4x4x90xbf16, #tpu.memory_space<vmem>>, vector<1x1x4x72xbf16>
    %8 = vector.shape_cast %7 : vector<1x1x4x72xbf16> to vector<4x72xbf16>
    %c1_10 = arith.constant 1 : index
    %c0_11 = arith.constant 0 : index
    %c0_12 = arith.constant 0 : index
    %9 = vector.load %arg2[%c1_10, %c0_11, %c0_12] : memref<9x8x4xbf16, #tpu.memory_space<vmem>>, vector<1x8x4xbf16>
    %10 = vector.shape_cast %9 : vector<1x8x4xbf16> to vector<8x4xbf16>
    %cst_13 = arith.constant dense<0.000000e+00> : vector<8x72xf32>
    %11 = tpu.matmul %10, %8, %cst_13 {dimension_numbers = #tpu.dot_dimension_numbers<[1], [0], [0], [1], [0, 0, 1, 1], [], []>} : vector<8x4xbf16>, vector<4x72xbf16>, vector<8x72xf32> -> vector<8x72xf32>
    %12 = arith.addf %6, %11 : vector<8x72xf32>
    %c0_14 = arith.constant 0 : index
    %c0_15 = arith.constant 0 : index
    %c0_16 = arith.constant 0 : index
    %c1_17 = arith.constant 1 : index
    %13 = vector.load %arg1[%c0_14, %c0_15, %c0_16, %c1_17] : memref<1x4x4x90xbf16, #tpu.memory_space<vmem>>, vector<1x1x4x72xbf16>
    %14 = vector.shape_cast %13 : vector<1x1x4x72xbf16> to vector<4x72xbf16>
    %c2 = arith.constant 2 : index
    %c0_18 = arith.constant 0 : index
    %c0_19 = arith.constant 0 : index
    %15 = vector.load %arg2[%c2, %c0_18, %c0_19] : memref<9x8x4xbf16, #tpu.memory_space<vmem>>, vector<1x8x4xbf16>
    %16 = vector.shape_cast %15 : vector<1x8x4xbf16> to vector<8x4xbf16>
    %cst_20 = arith.constant dense<0.000000e+00> : vector<8x72xf32>
    %17 = tpu.matmul %16, %14, %cst_20 {dimension_numbers = #tpu.dot_dimension_numbers<[1], [0], [0], [1], [0, 0, 1, 1], [], []>} : vector<8x4xbf16>, vector<4x72xbf16>, vector<8x72xf32> -> vector<8x72xf32>
    %18 = arith.addf %12, %17 : vector<8x72xf32>
    %c0_21 = arith.constant 0 : index
    %c2_22 = arith.constant 2 : index
    %c0_23 = arith.constant 0 : index
    %c0_24 = arith.constant 0 : index
    %19 = vector.load %arg1[%c0_21, %c2_22, %c0_23, %c0_24] : memref<1x4x4x90xbf16, #tpu.memory_space<vmem>>, vector<1x1x4x72xbf16>
    %20 = vector.shape_cast %19 : vector<1x1x4x72xbf16> to vector<4x72xbf16>
    %c3 = arith.constant 3 : index
    %c0_25 = arith.constant 0 : index
    %c0_26 = arith.constant 0 : index
    %21 = vector.load %arg2[%c3, %c0_25, %c0_26] : memref<9x8x4xbf16, #tpu.memory_space<vmem>>, vector<1x8x4xbf16>
    %22 = vector.shape_cast %21 : vector<1x8x4xbf16> to vector<8x4xbf16>
    %cst_27 = arith.constant dense<0.000000e+00> : vector<8x72xf32>
    %23 = tpu.matmul %22, %20, %cst_27 {dimension_numbers = #tpu.dot_dimension_numbers<[1], [0], [0], [1], [0, 0, 1, 1], [], []>} : vector<8x4xbf16>, vector<4x72xbf16>, vector<8x72xf32> -> vector<8x72xf32>
    %24 = arith.addf %18, %23 : vector<8x72xf32>
    %c0_28 = arith.constant 0 : index
    %c3_29 = arith.constant 3 : index
    %c0_30 = arith.constant 0 : index
    %c0_31 = arith.constant 0 : index
    %25 = vector.load %arg1[%c0_28, %c3_29, %c0_30, %c0_31] : memref<1x4x4x90xbf16, #tpu.memory_space<vmem>>, vector<1x1x4x72xbf16>
    %26 = vector.shape_cast %25 : vector<1x1x4x72xbf16> to vector<4x72xbf16>
    %c4 = arith.constant 4 : index
    %c0_32 = arith.constant 0 : index
    %c0_33 = arith.constant 0 : index
    %27 = vector.load %arg2[%c4, %c0_32, %c0_33] : memref<9x8x4xbf16, #tpu.memory_space<vmem>>, vector<1x8x4xbf16>
    %28 = vector.shape_cast %27 : vector<1x8x4xbf16> to vector<8x4xbf16>
    %cst_34 = arith.constant dense<0.000000e+00> : vector<8x72xf32>
    %29 = tpu.matmul %28, %26, %cst_34 {dimension_numbers = #tpu.dot_dimension_numbers<[1], [0], [0], [1], [0, 0, 1, 1], [], []>} : vector<8x4xbf16>, vector<4x72xbf16>, vector<8x72xf32> -> vector<8x72xf32>
    %30 = arith.addf %24, %29 : vector<8x72xf32>
    %c0_35 = arith.constant 0 : index
    %c2_36 = arith.constant 2 : index
    %c0_37 = arith.constant 0 : index
    %c1_38 = arith.constant 1 : index
    %31 = vector.load %arg1[%c0_35, %c2_36, %c0_37, %c1_38] : memref<1x4x4x90xbf16, #tpu.memory_space<vmem>>, vector<1x1x4x72xbf16>
    %32 = vector.shape_cast %31 : vector<1x1x4x72xbf16> to vector<4x72xbf16>
    %c5 = arith.constant 5 : index
    %c0_39 = arith.constant 0 : index
    %c0_40 = arith.constant 0 : index
    %33 = vector.load %arg2[%c5, %c0_39, %c0_40] : memref<9x8x4xbf16, #tpu.memory_space<vmem>>, vector<1x8x4xbf16>
    %34 = vector.shape_cast %33 : vector<1x8x4xbf16> to vector<8x4xbf16>
    %cst_41 = arith.constant dense<0.000000e+00> : vector<8x72xf32>
    %35 = tpu.matmul %34, %32, %cst_41 {dimension_numbers = #tpu.dot_dimension_numbers<[1], [0], [0], [1], [0, 0, 1, 1], [], []>} : vector<8x4xbf16>, vector<4x72xbf16>, vector<8x72xf32> -> vector<8x72xf32>
    %36 = arith.addf %30, %35 : vector<8x72xf32>
    %c0_42 = arith.constant 0 : index
    %c0_43 = arith.constant 0 : index
    %c0_44 = arith.constant 0 : index
    %c9 = arith.constant 9 : index
    %37 = vector.load %arg1[%c0_42, %c0_43, %c0_44, %c9] : memref<1x4x4x90xbf16, #tpu.memory_space<vmem>>, vector<1x1x4x72xbf16>
    %38 = vector.shape_cast %37 : vector<1x1x4x72xbf16> to vector<4x72xbf16>
    %c6 = arith.constant 6 : index
    %c0_45 = arith.constant 0 : index
    %c0_46 = arith.constant 0 : index
    %39 = vector.load %arg2[%c6, %c0_45, %c0_46] : memref<9x8x4xbf16, #tpu.memory_space<vmem>>, vector<1x8x4xbf16>
    %40 = vector.shape_cast %39 : vector<1x8x4xbf16> to vector<8x4xbf16>
    %cst_47 = arith.constant dense<0.000000e+00> : vector<8x72xf32>
    %41 = tpu.matmul %40, %38, %cst_47 {dimension_numbers = #tpu.dot_dimension_numbers<[1], [0], [0], [1], [0, 0, 1, 1], [], []>} : vector<8x4xbf16>, vector<4x72xbf16>, vector<8x72xf32> -> vector<8x72xf32>
    %42 = arith.addf %36, %41 : vector<8x72xf32>
    %c0_48 = arith.constant 0 : index
    %c1_49 = arith.constant 1 : index
    %c0_50 = arith.constant 0 : index
    %c9_51 = arith.constant 9 : index
    %43 = vector.load %arg1[%c0_48, %c1_49, %c0_50, %c9_51] : memref<1x4x4x90xbf16, #tpu.memory_space<vmem>>, vector<1x1x4x72xbf16>
    %44 = vector.shape_cast %43 : vector<1x1x4x72xbf16> to vector<4x72xbf16>
    %c7 = arith.constant 7 : index
    %c0_52 = arith.constant 0 : index
    %c0_53 = arith.constant 0 : index
    %45 = vector.load %arg2[%c7, %c0_52, %c0_53] : memref<9x8x4xbf16, #tpu.memory_space<vmem>>, vector<1x8x4xbf16>
    %46 = vector.shape_cast %45 : vector<1x8x4xbf16> to vector<8x4xbf16>
    %cst_54 = arith.constant dense<0.000000e+00> : vector<8x72xf32>
    %47 = tpu.matmul %46, %44, %cst_54 {dimension_numbers = #tpu.dot_dimension_numbers<[1], [0], [0], [1], [0, 0, 1, 1], [], []>} : vector<8x4xbf16>, vector<4x72xbf16>, vector<8x72xf32> -> vector<8x72xf32>
    %48 = arith.addf %42, %47 : vector<8x72xf32>
    %c0_55 = arith.constant 0 : index
    %c0_56 = arith.constant 0 : index
    %c0_57 = arith.constant 0 : index
    %c10 = arith.constant 10 : index
    %49 = vector.load %arg1[%c0_55, %c0_56, %c0_57, %c10] : memref<1x4x4x90xbf16, #tpu.memory_space<vmem>>, vector<1x1x4x72xbf16>
    %50 = vector.shape_cast %49 : vector<1x1x4x72xbf16> to vector<4x72xbf16>
    %c8 = arith.constant 8 : index
    %c0_58 = arith.constant 0 : index
    %c0_59 = arith.constant 0 : index
    %51 = vector.load %arg2[%c8, %c0_58, %c0_59] : memref<9x8x4xbf16, #tpu.memory_space<vmem>>, vector<1x8x4xbf16>
    %52 = vector.shape_cast %51 : vector<1x8x4xbf16> to vector<8x4xbf16>
    %cst_60 = arith.constant dense<0.000000e+00> : vector<8x72xf32>
    %53 = tpu.matmul %52, %50, %cst_60 {dimension_numbers = #tpu.dot_dimension_numbers<[1], [0], [0], [1], [0, 0, 1, 1], [], []>} : vector<8x4xbf16>, vector<4x72xbf16>, vector<8x72xf32> -> vector<8x72xf32>
    %54 = arith.addf %48, %53 : vector<8x72xf32>
    %c0_61 = arith.constant 0 : index
    %c0_62 = arith.constant 0 : index
    %55 = vector.load %arg3[%c0_61, %c0_62] : memref<8x1xf32, #tpu.memory_space<vmem>>, vector<8x1xf32>
    %56 = vector.broadcast %55 : vector<8x1xf32> to vector<8x72xf32>
    %57 = arith.addf %54, %56 : vector<8x72xf32>
    %cst_63 = arith.constant 0.000000e+00 : f32
    %58 = vector.broadcast %cst_63 : f32 to vector<8x72xf32>
    %59 = arith.maximumf %57, %58 : vector<8x72xf32>
    %c0_64 = arith.constant 0 : index
    %c0_65 = arith.constant 0 : index
    %c0_66 = arith.constant 0 : index
    %60 = vector.load %arg4[%c0_64, %c0_65, %c0_66] : memref<1x8x72xf32, #tpu.memory_space<vmem>>, vector<1x8x72xf32>
    %61 = vector.shape_cast %60 : vector<1x8x72xf32> to vector<8x72xf32>
    %62 = vector.shape_cast %59 : vector<8x72xf32> to vector<1x8x72xf32>
    tpu.vector_store %arg4[%c0_64, %c0_65, %c0_66], %62 {strides = array<i32>} : memref<1x8x72xf32, #tpu.memory_space<vmem>>, vector<1x8x72xf32>,
    return
  }
  func.func @transform_0(%arg0: i32) -> (i32, i32, i32, i32) {
    %c0_i32 = arith.constant 0 : i32
    %c0_i32_0 = arith.constant 0 : i32
    %c0_i32_1 = arith.constant 0 : i32
    %c0_i32_2 = arith.constant 0 : i32
    return %arg0, %c0_i32, %c0_i32_0, %c0_i32_1 : i32, i32, i32, i32
  }
  func.func @transform_1(%arg0: i32) -> (i32, i32, i32) {
    %c0_i32 = arith.constant 0 : i32
    %c0_i32_0 = arith.constant 0 : i32
    %c0_i32_1 = arith.constant 0 : i32
    %c0_i32_2 = arith.constant 0 : i32
    return %c0_i32, %c0_i32_0, %c0_i32_1 : i32, i32, i32
  }
  func.func @transform_2(%arg0: i32) -> (i32, i32) {
    %c0_i32 = arith.constant 0 : i32
    %c0_i32_0 = arith.constant 0 : i32
    %c0_i32_1 = arith.constant 0 : i32
    return %c0_i32, %c0_i32_0 : i32, i32
  }
  func.func @transform_3(%arg0: i32) -> (i32, i32, i32) {
    %c0_i32 = arith.constant 0 : i32
    %c0_i32_0 = arith.constant 0 : i32
    %c0_i32_1 = arith.constant 0 : i32
    return %arg0, %c0_i32, %c0_i32_0 : i32, i32, i32
  }
}

</mosaic_0001>

<bundles_post_ra>
// kernel: conv_bn_activation.1
= control target key start
LH: loop header
LB: loop body
LE: loop exit
PB: predicated region body
PF: predicated region fallthrough
CT: control target
= control target key end

     0   :  { %s546_s12 = smov 0   ;;  %s627_s0 = inlined_call_operand.vmem [shape: bf16[2,4,4,90], index: 0, kind: input, shape index: {}]   ;;  %s628_s1 = inlined_call_operand.vmem [shape: bf16[9,8,4], index: 1, kind: input, shape index: {}]   ;;  %s629_s2 = inlined_call_operand.vmem [shape: f32[8,1], index: 2, kind: input, shape index: {}]   ;;  %s630_s3 = inlined_call_operand.vmem [shape: f32[2,8,72], index: 3, kind: output, shape index: {}]  }
   0x1 LB: > { %s468_s13 = sadd.s32 4294967295, %s520_s12   ;;  %p472_p0 = scmp.ge.s32.totalorder %s520_s12, 1  ;;  %s520_s12 = sphi %s546_s12, %s13_s12  }
   0x2   : > { %p137_p1 = scmp.lt.s32.totalorder %s520_s12, 3 }
   0x4   : > { %p138_p2 = pnand %p472_p0, %p137_p1 }
   0x5   : > { %p160_p3 = scmp.lt.s32.totalorder (!%p138_p2), %s468_s13, 1  ;;  %s522_s18 = smov (!%p138_p2), 127  }
   0x6   : > { %141 = sbr.rel (%p138_p2) target bundleno = 313 (0x139), region = 32  ;;  %s523_s21 = smov (!%p138_p2), 119  }
   0x7   : > { %s524_s22 = smov (!%p138_p2), 118  }
   0xb   : > { %s632_s13 = smov (!%p160_p3, %s468_s13), 1  ;;  %vm180_vm0 = vcmask 1041408   ;;  %v477_v5 = vld [vmem:[%s628_s1 + $0x4] sm:$0xf]  ;;  %vm176_vm1 = vcmask 31744   ;;  %v525_v24 = vmov 0  }
   0xc   : > { %s499_s14 = sshll.u32 %s632_s13, 3  ;;  %v483_v15 = vld [vmem:[%s628_s1 + $0xc] sm:$0xf]  ;;  %v171_v16 = vld [vmem:[%s628_s1] sm:$0xf]  ;;  %512 = vset.pattern.permute.xlu2 %v525_v24  ;;  %513 = vset.pattern.permute.xlu0 %v525_v24  ;;  %vm413_vm2 = vcmask 588800  }
   0xd   : > { %s562_s17 = scalar_lea.vmem %s627_s0, %s499_s14  ;;  %v486_v19 = vld [vmem:[%s628_s1 + $0x10] sm:$0xf]  ;;  %v480_v22 = vld [vmem:[%s628_s1 + $0x8] sm:$0xf]  ;;  %v405_v23 = vld [vmem:[%s629_s2] sm:$0xff]  ;;  %s168_s19 = scalar_lea.vmem %s630_s3, %s499_s14 }
   0xe   : > { %v170_v0 = vld [vmem:[%s562_s17] sm:$0x3]  ;;  %v482_v1 = vld [vmem:[%s562_s17 + $0x4] sm:$0x3]  ;;  %v476_v3 = vld [vmem:[%s562_s17 + $0x2] sm:$0x3] }
   0xf   : > { %218 = vst [vmem:[#allocation1] ss:$4 sm:$0xff] %v170_v0  ;;  %v182_v4 = vsel %vm180_vm0, %v476_v3, 0  ;;  %v318_v6 = vld [vmem:[%s562_s17] sm:$0x3]  ;;  %v251_v13 = vsel %vm180_vm0, %v482_v1, 0 }
  0x10   : > { %191 = vmatpush.bf16.msra.mxu0 %v182_v4  ;;  %v492_v8 = vld [vmem:[%s562_s17 + $0x2] sm:$0x3]  ;;  %v376_v10 = vld [vmem:[%s562_s17] sm:$0x3]  ;;  %260 = vmatpush.bf16.msra.mxu3 %v251_v13  ;;  %v201_v14 = vsel %vm180_vm0, %v170_v0, 0 }
  0x11   : > { %210 = vmatpush.bf16.msra.mxu1 %v201_v14  ;;  %v485_v17 = vld [vmem:[%s562_s17 + $0x6] sm:$0x3]  ;;  %v495_v27 = vld [vmem:[%s628_s1 + $0x20] sm:$0xf]  ;;  %v490_v31 = vld [vmem:[%s628_s1 + $0x18] sm:$0xf] }
  0x12   : > { %v275_v18 = vsel %vm180_vm0, %v485_v17, 0  ;;  %v493_v35 = vld [vmem:[%s628_s1 + $0x1c] sm:$0xf]  ;;  %v488_v38 = vld [vmem:[%s628_s1 + $0x14] sm:$0xf] }
  0x13   : > { %478 = vmatmul.msk.bf16.vlgmr.msra.gmra.mxu0 %vm176_vm1, %v477_v5  ;;  %484 = vmatmul.msk.bf16.vlgmr.msra.gmra.mxu3 %vm176_vm1, %v483_v15 }
  0x14   : > { %284 = vmatpush.bf16.msrb.mxu0 %v275_v18  ;;  %479 = vmatmul.msk.bf16.vlgmr.msra.gmra.mxu1 %vm176_vm1, %v171_v16 }
  0x16   : > { %v219_v2 = vld.sshfl [vmem:[#allocation1] sm:$0xff pattern:$0x73625140] }
  0x17   : > { %221 = vrot.lane.b32.xlu0 %v219_v2, %s522_s18  ;;  %293 = vst [vmem:[#allocation1] ss:$4 sm:$0xff] %v482_v1 }
  0x1e   : > { %v294_v7 = vld.sshfl [vmem:[#allocation1] sm:$0xff pattern:$0x73625140] }
  0x1f   : > { %322 = vst [vmem:[#allocation1] ss:$4 sm:$0xff] %v318_v6 }
  0x23   : > { %487 = vmatmul.msk.bf16.vlgmr.msrb.gmra.mxu0 %vm176_vm1, %v486_v19 }
  0x26   : > { %v323_v9 = vld.sshfl [vmem:[#allocation1] sm:$0xff pattern:$0x73625140] }
  0x27   : > { %351 = vst [vmem:[#allocation1] ss:$4 sm:$0xff] %v492_v8  ;;  %325 = vrot.lane.b32.xlu0 %v323_v9, %s523_s21 }
  0x2e   : > { %v352_v11 = vld.sshfl [vmem:[#allocation1] sm:$0xff pattern:$0x73625140] }
  0x2f   : > { %354 = vrot.lane.b32.xlu1 %v352_v11, %s523_s21  ;;  %380 = vst [vmem:[#allocation1] ss:$4 sm:$0xff] %v376_v10 }
  0x36   : > { %v381_v12 = vld.sshfl [vmem:[#allocation1] sm:$0xff pattern:$0x73625140] }
  0x37   : > { %296 = vrot.lane.b32.xlu1 %v294_v7, %s522_s18  ;;  %383 = vrot.lane.b32.xlu2 %v381_v12, %s524_s22 }
  0x3f   : > { %408 = vperm.xlu2 %512, %v405_v23  }
  0x89   : > { %v222_v20 = vpop.permute.xlu0 %221 }
  0x8a   : > { %v227_v21 = vsel %vm180_vm0, %v222_v20, 0 }
  0x8b   : > { %236 = vmatpush.bf16.msra.mxu2 %v227_v21 }
  0x8e   : > { %481 = vmatmul.msk.bf16.vlgmr.msra.gmra.mxu2 %vm176_vm1, %v480_v22 }
  0x90   : > { %v193_v29 = vpop.f32.mrf.mxu0 }
  0x91   : > { %v384_v25 = vpop.permute.xlu2 %383  ;;  %v212_v39 = vpop.f32.mrf.mxu1 }
  0x92   : > { %v389_v26 = vsel %vm180_vm0, %v384_v25, 0  ;;  %v213_v49 = vadd.f32 %v212_v39, %v193_v29 }
  0x93   : > { %398 = vmatpush.bf16.msra.mxu0 %v389_v26 }
  0x96   : > { %496 = vmatmul.msk.bf16.vlgmr.msra.gmra.mxu0 %vm176_vm1, %v495_v27  ;;  %v262_v40 = vpop.f32.mrf.mxu3 }
  0x98   : > { %v195_v33 = vpop.f32.mrf.mxu0 }
  0x99   : > { %v326_v28 = vpop.permute.xlu0 %325  ;;  %v214_v42 = vpop.f32.mrf.mxu1 }
  0x9a   : > { %v331_v30 = vsel %vm180_vm0, %v326_v28, 0  ;;  %v409_v60 = vpop.permute.xlu2 %408 }
  0x9b   : > { %340 = vmatpush.bf16.msrb.mxu2 %v331_v30 }
  0x9e   : > { %491 = vmatmul.msk.bf16.vlgmr.msrb.gmra.mxu2 %vm176_vm1, %v490_v31  ;;  %v264_v43 = vpop.f32.mrf.mxu3 }
  0xa0   : > { %v286_v41 = vpop.f32.mrf.mxu0 }
  0xa1   : > { %v355_v32 = vpop.permute.xlu1 %354 }
  0xa2   : > { %v360_v34 = vsel %vm180_vm0, %v355_v32, 0 }
  0xa3   : > { %369 = vmatpush.bf16.msrb.mxu3 %v360_v34 }
  0xa6   : > { %494 = vmatmul.msk.bf16.vlgmr.msrb.gmra.mxu3 %vm176_vm1, %v493_v35 }
  0xa8   : > { %v288_v44 = vpop.f32.mrf.mxu0 }
  0xa9   : > { %v297_v36 = vpop.permute.xlu1 %296 }
  0xaa   : > { %v302_v37 = vsel %vm180_vm0, %v297_v36, 0 }
  0xab   : > { %311 = vmatpush.bf16.msrb.mxu1 %v302_v37 }
  0xae   : > { %489 = vmatmul.msk.bf16.vlgmr.msrb.gmra.mxu1 %vm176_vm1, %v488_v38 }
 0x111   : > { %v238_v45 = vpop.f32.mrf.mxu2 }
 0x112   : > { %v242_v51 = vadd.f32 %v238_v45, %v213_v49 }
 0x113   : > { %v400_v46 = vpop.f32.mrf.mxu0 }
 0x114   : > { %v266_v52 = vadd.f32 %v262_v40, %v242_v51 }
 0x116   : > { %v290_v55 = vadd.f32 %v286_v41, %v266_v52 }
 0x119   : > { %v240_v47 = vpop.f32.mrf.mxu2 }
 0x11b   : > { %v402_v48 = vpop.f32.mrf.mxu0 }
 0x121   : > { %v342_v50 = vpop.f32.mrf.mxu2 }
 0x129   : > { %v371_v53 = vpop.f32.mrf.mxu3  ;;  %v344_v54 = vpop.f32.mrf.mxu2 }
 0x12b   : > { %v313_v56 = vpop.f32.mrf.mxu1 }
 0x12c   : > { %v317_v57 = vadd.f32 %v313_v56, %v290_v55 }
 0x12e   : > { %v346_v58 = vadd.f32 %v342_v50, %v317_v57 }
 0x130   : > { %v375_v59 = vadd.f32 %v371_v53, %v346_v58 }
 0x131   : > { %v373_v61 = vpop.f32.mrf.mxu3 }
 0x132   : > { %v404_v62 = vadd.f32 %v400_v46, %v375_v59 }
 0x133   : > { %v315_v63 = vpop.f32.mrf.mxu1 }
 0x134   : > { %v411_v0 = vadd.f32 %v409_v60, %v404_v62 }
 0x136   : > { %v412_v1 = vmax.f32 %v411_v0, 0.0 }
 0x138   : > { %414 = vst.msk [vmem:[%s168_s19] sm:$0xff] %vm413_vm2, %v412_v1 }
 0x139 PF: > { %s13_s12 = sadd.s32 1, %s520_s12  }
 0x13a   : > { %p10_p4 = scmp.ge.s32.totalorder %s13_s12, 4  }
 0x13c   :  { %12 = sbr.rel (!%p10_p4) target bundleno = 1 (0x1), region = 73 }

</bundles_post_ra>
